<compile_context>
chip_gen: v5e
topology: v5e:2x2
jax: 0.10.0
libtpu: 0.0.40
codegen_flags: <defaults>
</compile_context>

<pallas_src>
import jax
import jax.numpy as jnp
from jax import lax
from jax.experimental import pallas as pl
from jax.experimental.pallas import tpu as pltpu

C_IN, C_OUT = 22, 256
H, W, K = 8, 8, 3
HW = H * W
K_RAW = K * K * C_IN          # 198
K_PAD = 224                   # contraction dim padded (multiple of 32, < 256)
BN_EPS = 1e-5


def _gemm_bias_relu_kernel(p_ref, w_ref, b_ref, o_ref):
    """One batch-block per grid step.

    p_ref: (M_blk, K_PAD)   im2col patches (bf16 or f32)
    w_ref: (K_PAD, C_OUT)   conv weights with BN scale folded in
    b_ref: (1, C_OUT)       folded bias ((conv_b - mean)*scale + beta), f32
    o_ref: (M_blk, C_OUT)   output rows (one row per output pixel), f32
    """
    acc = jnp.dot(p_ref[...], w_ref[...], preferred_element_type=jnp.float32)
    o_ref[...] = jnp.maximum(acc + b_ref[...], 0.0).astype(o_ref.dtype)


def conv_block_forward(s, conv_w, conv_b, bn_gamma, bn_beta, bn_mean, bn_var,
                       *, block_imgs=None, operand_dtype=jnp.bfloat16):
    """Mirrors ConvBlock.forward.  Input `s` reshapes to (-1, 22, 8, 8);
    output is NCHW (N, 256, 8, 8) float32."""
    x = s.reshape(-1, C_IN, H, W).astype(jnp.float32)       # s.view(-1, 22, 8, 8)
    n = x.shape[0]

    if block_imgs is None:
        # 64 images/step -> M=4096 rows; ~12 MiB double-buffered VMEM, safe on
        # v5e/v6e/v7x.  Small n just uses one block.
        block_imgs = max(1, min(64, n))
    n_pad = -(-n // block_imgs) * block_imgs

    # --- im2col (single fused XLA pass: transpose + pad + gather) ----------
    x_nhwc = jnp.transpose(x, (0, 2, 3, 1))                  # (n, 8, 8, 22)
    x_sp = jnp.pad(x_nhwc, ((0, n_pad - n), (1, 1), (1, 1), (0, 0)))
    taps = [x_sp[:, kh:kh + H, kw:kw + W, :]
            for kh in range(K) for kw in range(K)]           # 9 x (n_pad,8,8,22)
    patches = jnp.concatenate(taps, axis=-1).reshape(n_pad * HW, K_RAW)
    patches = jnp.pad(patches, ((0, 0), (0, K_PAD - K_RAW))).astype(operand_dtype)

    # --- fold eval-mode BatchNorm (+ conv bias) into weight / bias ---------
    scale = bn_gamma / jnp.sqrt(bn_var + BN_EPS)             # (256,)
    bias = ((conv_b - bn_mean) * scale + bn_beta).reshape(1, C_OUT)
    bias = bias.astype(jnp.float32)
    # (C_OUT, C_IN, KH, KW) -> (KH, KW, C_IN, C_OUT) -> (198, 256), scale folded
    w2 = jnp.transpose(conv_w, (2, 3, 1, 0)).reshape(K_RAW, C_OUT) * scale[None, :]
    w2 = jnp.pad(w2, ((0, K_PAD - K_RAW), (0, 0))).astype(operand_dtype)

    m_blk = block_imgs * HW
    out_flat = pl.pallas_call(
        _gemm_bias_relu_kernel,
        out_shape=jax.ShapeDtypeStruct((n_pad * HW, C_OUT), jnp.float32),
        grid_spec=pltpu.PrefetchScalarGridSpec(
            num_scalar_prefetch=0,
            grid=(n_pad // block_imgs,),
            in_specs=[
                pl.BlockSpec((m_blk, K_PAD), lambda i: (i, 0)),
                pl.BlockSpec((K_PAD, C_OUT), lambda i: (0, 0)),
                pl.BlockSpec((1, C_OUT), lambda i: (0, 0)),
            ],
            out_specs=pl.BlockSpec((m_blk, C_OUT), lambda i: (i, 0)),
        ),
        compiler_params=pltpu.CompilerParams(
            dimension_semantics=("parallel",),
            vmem_limit_bytes=48 * 1024 * 1024),
    )(patches, w2, bias)

    # rows -> (n, 8, 8, 256) -> NCHW to match PyTorch's output convention
    out_nhwc = out_flat[: n * HW].reshape(n, H, W, C_OUT)
    return jnp.transpose(out_nhwc, (0, 3, 1, 2))


def _reference(s, conv_w, conv_b, bn_gamma, bn_beta, bn_mean, bn_var):
    """Plain-JAX reference (NCHW conv + eval-mode BN + ReLU)."""
    x = s.reshape(-1, C_IN, H, W).astype(jnp.float32)
    y = lax.conv_general_dilated(
        x, conv_w.astype(jnp.float32),
        window_strides=(1, 1), padding=((1, 1), (1, 1)),
        dimension_numbers=("NCHW", "OIHW", "NCHW"),
        precision=lax.Precision.HIGHEST)
    y = y + conv_b.reshape(1, C_OUT, 1, 1)
    inv = 1.0 / jnp.sqrt(bn_var + BN_EPS)
    y = (y - bn_mean.reshape(1, C_OUT, 1, 1)) * (bn_gamma * inv).reshape(1, C_OUT, 1, 1)
    y = y + bn_beta.reshape(1, C_OUT, 1, 1)
    return jnp.maximum(y, 0.0)


if __name__ == "__main__":
    key = jax.random.PRNGKey(0)
    k_x, k_w, k_b, k_g, k_be, k_m, k_v = jax.random.split(key, 7)

    N = 2
    x = jax.random.normal(k_x, (N, C_IN, H, W), dtype=jnp.float32)

    # Deterministic synthetic parameters (shapes from ConvBlock.__init__).
    conv_w = jax.random.normal(k_w, (C_OUT, C_IN, K, K), dtype=jnp.float32) * 0.05
    conv_b = jax.random.normal(k_b, (C_OUT,), dtype=jnp.float32) * 0.05
    bn_gamma = 1.0 + 0.1 * jax.random.normal(k_g, (C_OUT,), dtype=jnp.float32)
    bn_beta = 0.1 * jax.random.normal(k_be, (C_OUT,), dtype=jnp.float32)
    bn_mean = 0.1 * jax.random.normal(k_m, (C_OUT,), dtype=jnp.float32)
    bn_var = jnp.abs(jax.random.normal(k_v, (C_OUT,), dtype=jnp.float32)) + 0.5

    ref = _reference(x, conv_w, conv_b, bn_gamma, bn_beta, bn_mean, bn_var)

    # 1) exactness check with f32 MXU operands (tight tolerance)
    out_f32 = conv_block_forward(x, conv_w, conv_b, bn_gamma, bn_beta, bn_mean,
                                 bn_var, operand_dtype=jnp.float32)
    out_f32 = jax.block_until_ready(out_f32)
    assert out_f32.shape == (N, C_OUT, H, W), out_f32.shape
    assert jnp.allclose(out_f32, ref, atol=1e-4, rtol=1e-4), \
        float(jnp.max(jnp.abs(out_f32 - ref)))

    # 2) fast path: bf16 MXU operands, f32 accumulation (per perf review);
    #    looser tolerance accounts for bf16 rounding of the operands.
    out_bf16 = conv_block_forward(x, conv_w, conv_b, bn_gamma, bn_beta, bn_mean,
                                  bn_var, operand_dtype=jnp.bfloat16)
    out_bf16 = jax.block_until_ready(out_bf16)
    assert out_bf16.shape == (N, C_OUT, H, W), out_bf16.shape
    assert jnp.allclose(out_bf16, ref, atol=3e-2, rtol=3e-2), \
        float(jnp.max(jnp.abs(out_bf16 - ref)))

    print("KERNEL_OK")
</pallas_src>

<mosaic_0001>
module attributes {stable_mosaic.version = 11 : i64} {
  func.func @_gemm_bias_relu_kernel(%arg0: i32, %arg1: memref<128x224xf32, #tpu.memory_space<vmem>>, %arg2: memref<224x256xf32, #tpu.memory_space<vmem>>, %arg3: memref<1x256xf32, #tpu.memory_space<vmem>>, %arg4: memref<128x256xf32, #tpu.memory_space<vmem>>) attributes {dimension_semantics = [#tpu.dimension_semantics<parallel>], iteration_bounds = array<i64: 1>, scalar_prefetch = 0 : i64, scratch_operands = 0 : i64, tpu.core_type = #tpu.core_type<tc>, window_params = [{transform_indices = @transform_0, window_bounds = array<i64: 128, 224>}, {pipeline_mode = #tpu.pipeline_mode<synchronous>, transform_indices = @transform_1, window_bounds = array<i64: 224, 256>}, {pipeline_mode = #tpu.pipeline_mode<synchronous>, transform_indices = @transform_2, window_bounds = array<i64: 1, 256>}, {transform_indices = @transform_3, window_bounds = array<i64: 128, 256>}]} {
    %c0 = arith.constant 0 : index
    %c0_0 = arith.constant 0 : index
    %0 = vector.load %arg1[%c0, %c0_0] : memref<128x224xf32, #tpu.memory_space<vmem>>, vector<128x224xf32>
    %c0_1 = arith.constant 0 : index
    %c0_2 = arith.constant 0 : index
    %1 = vector.load %arg2[%c0_1, %c0_2] : memref<224x256xf32, #tpu.memory_space<vmem>>, vector<224x256xf32>
    %cst = arith.constant dense<0.000000e+00> : vector<128x256xf32>
    %2 = tpu.matmul %0, %1, %cst {dimension_numbers = #tpu.dot_dimension_numbers<[1], [0], [0], [1], [0, 0, 1, 1], [], []>} : vector<128x224xf32>, vector<224x256xf32>, vector<128x256xf32> -> vector<128x256xf32>
    %c0_3 = arith.constant 0 : index
    %c0_4 = arith.constant 0 : index
    %3 = vector.load %arg3[%c0_3, %c0_4] : memref<1x256xf32, #tpu.memory_space<vmem>>, vector<1x256xf32>
    %4 = vector.broadcast %3 : vector<1x256xf32> to vector<128x256xf32>
    %5 = arith.addf %2, %4 : vector<128x256xf32>
    %cst_5 = arith.constant 0.000000e+00 : f32
    %6 = vector.broadcast %cst_5 : f32 to vector<128x256xf32>
    %7 = arith.maximumf %5, %6 : vector<128x256xf32>
    %c0_6 = arith.constant 0 : index
    %c0_7 = arith.constant 0 : index
    %8 = vector.load %arg4[%c0_6, %c0_7] : memref<128x256xf32, #tpu.memory_space<vmem>>, vector<128x256xf32>
    tpu.vector_store %arg4[%c0_6, %c0_7], %7 {strides = array<i32>} : memref<128x256xf32, #tpu.memory_space<vmem>>, vector<128x256xf32>,
    return
  }
  func.func @transform_0(%arg0: i32) -> (i32, i32) {
    %c0_i32 = arith.constant 0 : i32
    %c0_i32_0 = arith.constant 0 : i32
    return %arg0, %c0_i32 : i32, i32
  }
  func.func @transform_1(%arg0: i32) -> (i32, i32) {
    %c0_i32 = arith.constant 0 : i32
    %c0_i32_0 = arith.constant 0 : i32
    %c0_i32_1 = arith.constant 0 : i32
    return %c0_i32, %c0_i32_0 : i32, i32
  }
  func.func @transform_2(%arg0: i32) -> (i32, i32) {
    %c0_i32 = arith.constant 0 : i32
    %c0_i32_0 = arith.constant 0 : i32
    %c0_i32_1 = arith.constant 0 : i32
    return %c0_i32, %c0_i32_0 : i32, i32
  }
  func.func @transform_3(%arg0: i32) -> (i32, i32) {
    %c0_i32 = arith.constant 0 : i32
    %c0_i32_0 = arith.constant 0 : i32
    return %arg0, %c0_i32 : i32, i32
  }
}

</mosaic_0001>

<bundles_post_ra>
// kernel: tpu_custom_call.1
= control target key start
LH: loop header
LB: loop body
LE: loop exit
PB: predicated region body
PF: predicated region fallthrough
CT: control target
= control target key end

     0   :  { %s922_s0 = inlined_call_operand.vmem [shape: f32[128,224], index: 0, kind: input, shape index: {}]   ;;  %s923_s1 = inlined_call_operand.vmem [shape: f32[224,256], index: 1, kind: input, shape index: {}]   ;;  %s924_s2 = inlined_call_operand.vmem [shape: f32[1,256], index: 2, kind: input, shape index: {}]   ;;  %s925_s3 = inlined_call_operand.hbm [shape: f32[128,256], index: 3, kind: output, shape index: {}]  }
   0x1   :  { %v78_v0 = vld [vmem:[%s923_s1 + $0xf8] sm:$0xff]  ;;  %v76_v1 = vld [vmem:[%s923_s1 + $0xe8] sm:$0xff]  ;;  %v77_v2 = vld [vmem:[%s923_s1 + $0xf0] sm:$0xff] }
   0x2   :  { %288 = vmatpush.msra.mxu2 %v78_v0  ;;  %v75_v3 = vld [vmem:[%s923_s1 + $0xe0] sm:$0xff]  ;;  %v74_v4 = vld [vmem:[%s923_s1 + $0xd8] sm:$0xff]  ;;  %158 = vmatpush.msra.mxu0 %v77_v2  ;;  %v73_v5 = vld [vmem:[%s923_s1 + $0xd0] sm:$0xff] }
   0x3   :  { %v102_v6 = vld [vmem:[%s923_s1 + $0x1b8] sm:$0xff]  ;;  %v72_v7 = vld [vmem:[%s923_s1 + $0xc8] sm:$0xff]  ;;  %v71_v9 = vld [vmem:[%s923_s1 + $0xc0] sm:$0xff] }
   0x4   :  { %289 = vmatpush.msra.mxu2 %v76_v1  ;;  %159 = vmatpush.msra.mxu0 %v75_v3  ;;  %v100_v8 = vld [vmem:[%s923_s1 + $0x1a8] sm:$0xff]  ;;  %v98_v10 = vld [vmem:[%s923_s1 + $0x198] sm:$0xff]  ;;  %v101_v11 = vld [vmem:[%s923_s1 + $0x1b0] sm:$0xff] }
   0x5   :  { %357 = vmatpush.msra.mxu3 %v102_v6  ;;  %v70_v12 = vld [vmem:[%s923_s1 + $0xb8] sm:$0xff]  ;;  %v69_v13 = vld [vmem:[%s923_s1 + $0xb0] sm:$0xff]  ;;  %227 = vmatpush.msra.mxu1 %v101_v11  ;;  %v96_v14 = vld [vmem:[%s923_s1 + $0x188] sm:$0xff] }
   0x6   :  { %290 = vmatpush.msra.mxu2 %v74_v4  ;;  %160 = vmatpush.msra.mxu0 %v73_v5  ;;  %v99_v15 = vld [vmem:[%s923_s1 + $0x1a0] sm:$0xff]  ;;  %v68_v16 = vld [vmem:[%s923_s1 + $0xa8] sm:$0xff]  ;;  %v97_v17 = vld [vmem:[%s923_s1 + $0x190] sm:$0xff] }
   0x7   :  { %358 = vmatpush.msra.mxu3 %v100_v8  ;;  %v67_v18 = vld [vmem:[%s923_s1 + $0xa0] sm:$0xff]  ;;  %228 = vmatpush.msra.mxu1 %v99_v15  ;;  %v94_v19 = vld [vmem:[%s923_s1 + $0x178] sm:$0xff]  ;;  %v65_v22 = vld [vmem:[%s923_s1 + $0x90] sm:$0xff] }
   0x8   :  { %291 = vmatpush.msra.mxu2 %v72_v7  ;;  %161 = vmatpush.msra.mxu0 %v71_v9  ;;  %v66_v20 = vld [vmem:[%s923_s1 + $0x98] sm:$0xff]  ;;  %v95_v21 = vld [vmem:[%s923_s1 + $0x180] sm:$0xff]  ;;  %v92_v23 = vld [vmem:[%s923_s1 + $0x168] sm:$0xff] }
   0x9   :  { %359 = vmatpush.msra.mxu3 %v98_v10  ;;  %229 = vmatpush.msra.mxu1 %v97_v17  ;;  %v64_v24 = vld [vmem:[%s923_s1 + $0x88] sm:$0xff]  ;;  %v93_v25 = vld [vmem:[%s923_s1 + $0x170] sm:$0xff]  ;;  %v63_v26 = vld [vmem:[%s923_s1 + $0x80] sm:$0xff] }
   0xa   :  { %292 = vmatpush.msra.mxu2 %v70_v12  ;;  %162 = vmatpush.msra.mxu0 %v69_v13  ;;  %v90_v27 = vld [vmem:[%s923_s1 + $0x158] sm:$0xff]  ;;  %v91_v29 = vld [vmem:[%s923_s1 + $0x160] sm:$0xff]  ;;  %v61_v30 = vld [vmem:[%s923_s1 + $0x70] sm:$0xff] }
   0xb   :  { %360 = vmatpush.msra.mxu3 %v96_v14  ;;  %230 = vmatpush.msra.mxu1 %v95_v21  ;;  %v62_v28 = vld [vmem:[%s923_s1 + $0x78] sm:$0xff]  ;;  %v88_v31 = vld [vmem:[%s923_s1 + $0x148] sm:$0xff]  ;;  %v89_v33 = vld [vmem:[%s923_s1 + $0x150] sm:$0xff] }
   0xc   :  { %293 = vmatpush.msra.mxu2 %v68_v16  ;;  %163 = vmatpush.msra.mxu0 %v67_v18  ;;  %v60_v32 = vld [vmem:[%s923_s1 + $0x68] sm:$0xff]  ;;  %v59_v34 = vld [vmem:[%s923_s1 + $0x60] sm:$0xff]  ;;  %v86_v35 = vld [vmem:[%s923_s1 + $0x138] sm:$0xff] }
   0xd   :  { %361 = vmatpush.msra.mxu3 %v94_v19  ;;  %231 = vmatpush.msra.mxu1 %v93_v25  ;;  %v58_v36 = vld [vmem:[%s923_s1 + $0x58] sm:$0xff]  ;;  %v87_v37 = vld [vmem:[%s923_s1 + $0x140] sm:$0xff]  ;;  %v57_v38 = vld [vmem:[%s923_s1 + $0x50] sm:$0xff] }
   0xe   :  { %294 = vmatpush.msra.mxu2 %v66_v20  ;;  %164 = vmatpush.msra.mxu0 %v65_v22  ;;  %v84_v39 = vld [vmem:[%s923_s1 + $0x128] sm:$0xff]  ;;  %v85_v41 = vld [vmem:[%s923_s1 + $0x130] sm:$0xff]  ;;  %v55_v42 = vld [vmem:[%s923_s1 + $0x40] sm:$0xff] }
   0xf   :  { %362 = vmatpush.msra.mxu3 %v92_v23  ;;  %232 = vmatpush.msra.mxu1 %v91_v29  ;;  %v56_v40 = vld [vmem:[%s923_s1 + $0x48] sm:$0xff]  ;;  %v82_v43 = vld [vmem:[%s923_s1 + $0x118] sm:$0xff] }
  0x10   :  { %295 = vmatpush.msra.mxu2 %v64_v24  ;;  %165 = vmatpush.msra.mxu0 %v63_v26 }
  0x11   :  { %363 = vmatpush.msra.mxu3 %v90_v27  ;;  %233 = vmatpush.msra.mxu1 %v89_v33 }
  0x12   :  { %296 = vmatpush.msra.mxu2 %v62_v28  ;;  %166 = vmatpush.msra.mxu0 %v61_v30 }
  0x13   :  { %364 = vmatpush.msra.mxu3 %v88_v31  ;;  %234 = vmatpush.msra.mxu1 %v87_v37 }
  0x14   :  { %297 = vmatpush.msra.mxu2 %v60_v32  ;;  %167 = vmatpush.msra.mxu0 %v59_v34 }
  0x15   :  { %365 = vmatpush.msra.mxu3 %v86_v35 }
  0x16   :  { %298 = vmatpush.msra.mxu2 %v58_v36 }
  0x17   :  { %8 = vsyncpa [#allocation3], 0  ;;  %v54_v44 = vld [vmem:[%s923_s1 + $0x38] sm:$0xff]  ;;  %168 = vmatpush.msra.mxu0 %v57_v38  ;;  %366 = vmatpush.msra.mxu3 %v84_v39  ;;  %v83_v45 = vld [vmem:[%s923_s1 + $0x120] sm:$0xff]  ;;  %vm109_vm0 = vcmask 785408   ;;  %s488_s27 = sshll.u32 %s925_s3, 4  ;;  %s489_s27 = int_to_ptr.hbm [resolvable:$true] %s488_s27 }
  0x18   :  { %299 = vmatpush.msra.mxu2 %v56_v40  ;;  %v53_v46 = vld [vmem:[%s923_s1 + $0x30] sm:$0xff]  ;;  %235 = vmatpush.msra.mxu1 %v85_v41  ;;  %v80_v47 = vld [vmem:[%s923_s1 + $0x108] sm:$0xff]  ;;  %v51_v50 = vld [vmem:[%s923_s1 + $0x20] sm:$0xff]  ;;  %s562_s28 = smov 256   ;;  %s563_s29 = smov 16  }
  0x19   :  { %v52_v48 = vld [vmem:[%s923_s1 + $0x28] sm:$0xff]  ;;  %169 = vmatpush.msra.mxu0 %v55_v42  ;;  %367 = vmatpush.msra.mxu3 %v82_v43  ;;  %v81_v51 = vld [vmem:[%s923_s1 + $0x110] sm:$0xff]  ;;  %v50_v52 = vld [vmem:[%s923_s1 + $0x18] sm:$0xff] }
  0x1a   :  { %v16_v49 = vld [vmem:[%s922_s0 + $0x8] sm:$0xff]  ;;  %300 = vmatpush.msra.mxu2 %v54_v44  ;;  %236 = vmatpush.msra.mxu1 %v83_v45  ;;  %v49_v53 = vld [vmem:[%s923_s1 + $0x10] sm:$0xff]  ;;  %v79_v54 = vld [vmem:[%s923_s1 + $0x100] sm:$0xff] }
  0x1b   :  { %170 = vmatpush.msra.mxu0 %v53_v46  ;;  %368 = vmatpush.msra.mxu3 %v80_v47  ;;  %v48_v55 = vld [vmem:[%s923_s1 + $0x8] sm:$0xff]  ;;  %v15_v56 = vld [vmem:[%s922_s0] sm:$0xff]  ;;  %v18_v58 = vld [vmem:[%s922_s0 + $0x18] sm:$0xff] }
  0x1c   :  { %301 = vmatpush.msra.mxu2 %v52_v48  ;;  %516 = vmatmul.msk.f32.vlgmr.msra.gmra.mxu3 %vm109_vm0, %v16_v49  ;;  %v47_v57 = vld [vmem:[%s923_s1] sm:$0xff]  ;;  %v17_v59 = vld [vmem:[%s922_s0 + $0x10] sm:$0xff]  ;;  %v20_v60 = vld [vmem:[%s922_s0 + $0x28] sm:$0xff] }
  0x1d   :  { %171 = vmatpush.msra.mxu0 %v51_v50  ;;  %237 = vmatpush.msra.mxu1 %v81_v51  ;;  %v19_v61 = vld [vmem:[%s922_s0 + $0x20] sm:$0xff]  ;;  %v22_v62 = vld [vmem:[%s922_s0 + $0x38] sm:$0xff]  ;;  %v21_v63 = vld [vmem:[%s922_s0 + $0x30] sm:$0xff] }
  0x1e   :  { %302 = vmatpush.msra.mxu2 %v50_v52  ;;  %v24_v0 = vld [vmem:[%s922_s0 + $0x48] sm:$0xff]  ;;  %v23_v1 = vld [vmem:[%s922_s0 + $0x40] sm:$0xff]  ;;  %v26_v2 = vld [vmem:[%s922_s0 + $0x58] sm:$0xff] }
  0x1f   :  { %172 = vmatpush.msra.mxu0 %v49_v53  ;;  %238 = vmatpush.msra.mxu1 %v79_v54  ;;  %v25_v3 = vld [vmem:[%s922_s0 + $0x50] sm:$0xff]  ;;  %v28_v4 = vld [vmem:[%s922_s0 + $0x68] sm:$0xff]  ;;  %v27_v5 = vld [vmem:[%s922_s0 + $0x60] sm:$0xff] }
  0x20   :  { %303 = vmatpush.msra.mxu2 %v48_v55  ;;  %500 = vmatmul.msk.f32.vlgmr.msra.gmra.mxu1 %vm109_vm0, %v16_v49  ;;  %v30_v6 = vld [vmem:[%s922_s0 + $0x78] sm:$0xff]  ;;  %v29_v7 = vld [vmem:[%s922_s0 + $0x70] sm:$0xff]  ;;  %v32_v8 = vld [vmem:[%s922_s0 + $0x88] sm:$0xff] }
  0x21   :  { %304 = vmatmul.f32.vlgmr.msra.gmra.mxu2 %v15_v56  ;;  %173 = vmatpush.msra.mxu0 %v47_v57  ;;  %v31_v9 = vld [vmem:[%s922_s0 + $0x80] sm:$0xff]  ;;  %v34_v10 = vld [vmem:[%s922_s0 + $0x98] sm:$0xff]  ;;  %v33_v11 = vld [vmem:[%s922_s0 + $0x90] sm:$0xff] }
  0x22   :  { %174 = vmatmul.f32.vlgmr.msra.gmra.mxu0 %v15_v56  ;;  %v36_v12 = vld [vmem:[%s922_s0 + $0xa8] sm:$0xff]  ;;  %v35_v13 = vld [vmem:[%s922_s0 + $0xa0] sm:$0xff]  ;;  %v38_v14 = vld [vmem:[%s922_s0 + $0xb8] sm:$0xff] }
  0x23   :  { %v37_v15 = vld [vmem:[%s922_s0 + $0xb0] sm:$0xff]  ;;  %v40_v16 = vld [vmem:[%s922_s0 + $0xc8] sm:$0xff]  ;;  %v39_v17 = vld [vmem:[%s922_s0 + $0xc0] sm:$0xff] }
  0x24   :  { %517 = vmatmul.msk.f32.gmra.mxu3 %vm109_vm0, %v18_v58  ;;  %v42_v18 = vld [vmem:[%s922_s0 + $0xd8] sm:$0xff]  ;;  %v41_v19 = vld [vmem:[%s922_s0 + $0xd0] sm:$0xff]  ;;  %v44_v20 = vld [vmem:[%s922_s0 + $0xe8] sm:$0xff] }
  0x25   :  { %v43_v21 = vld [vmem:[%s922_s0 + $0xe0] sm:$0xff]  ;;  %v46_v22 = vld [vmem:[%s922_s0 + $0xf8] sm:$0xff]  ;;  %v45_v23 = vld [vmem:[%s922_s0 + $0xf0] sm:$0xff]  ;;  %s561_s0 = smov [#allocation2]  }
  0x26   :  { %v103_v24 = vld [vmem:[%s924_s2] sm:$0x3]  ;;  %s486_s2 = sshll.u32 %s561_s0, 4  ;;  %s487_s2 = int_to_ptr.vmem [resolvable:$true] %s486_s2 }
  0x27   :  { %v883_v25 = vperm.slane %v103_v24, 0  ;;  %v886_v30 = vperm.slane %v103_v24, 1 }
  0x28   :  { %501 = vmatmul.msk.f32.gmra.mxu1 %vm109_vm0, %v18_v58 }
  0x29   :  { %307 = vmatmul.f32.gmra.mxu2 %v17_v59 }
  0x2a   :  { %177 = vmatmul.f32.gmra.mxu0 %v17_v59 }
  0x2c   :  { %518 = vmatmul.msk.f32.gmra.mxu3 %vm109_vm0, %v20_v60 }
  0x30   :  { %502 = vmatmul.msk.f32.gmra.mxu1 %vm109_vm0, %v20_v60 }
  0x31   :  { %310 = vmatmul.f32.gmra.mxu2 %v19_v61 }
  0x32   :  { %180 = vmatmul.f32.gmra.mxu0 %v19_v61 }
  0x34   :  { %519 = vmatmul.msk.f32.gmra.mxu3 %vm109_vm0, %v22_v62 }
  0x38   :  { %503 = vmatmul.msk.f32.gmra.mxu1 %vm109_vm0, %v22_v62 }
  0x39   :  { %313 = vmatmul.f32.gmra.mxu2 %v21_v63 }
  0x3a   :  { %183 = vmatmul.f32.gmra.mxu0 %v21_v63 }
  0x3c   :  { %520 = vmatmul.msk.f32.gmra.mxu3 %vm109_vm0, %v24_v0 }
  0x40   :  { %504 = vmatmul.msk.f32.gmra.mxu1 %vm109_vm0, %v24_v0 }
  0x41   :  { %316 = vmatmul.f32.gmra.mxu2 %v23_v1 }
  0x42   :  { %186 = vmatmul.f32.gmra.mxu0 %v23_v1 }
  0x44   :  { %521 = vmatmul.msk.f32.gmra.mxu3 %vm109_vm0, %v26_v2 }
  0x48   :  { %505 = vmatmul.msk.f32.gmra.mxu1 %vm109_vm0, %v26_v2 }
  0x49   :  { %319 = vmatmul.f32.gmra.mxu2 %v25_v3 }
  0x4a   :  { %189 = vmatmul.f32.gmra.mxu0 %v25_v3 }
  0x4c   :  { %522 = vmatmul.msk.f32.gmra.mxu3 %vm109_vm0, %v28_v4 }
  0x50   :  { %506 = vmatmul.msk.f32.gmra.mxu1 %vm109_vm0, %v28_v4 }
  0x51   :  { %322 = vmatmul.f32.gmra.mxu2 %v27_v5 }
  0x52   :  { %192 = vmatmul.f32.gmra.mxu0 %v27_v5 }
  0x54   :  { %523 = vmatmul.msk.f32.gmra.mxu3 %vm109_vm0, %v30_v6 }
  0x58   :  { %507 = vmatmul.msk.f32.gmra.mxu1 %vm109_vm0, %v30_v6 }
  0x59   :  { %325 = vmatmul.f32.gmra.mxu2 %v29_v7 }
  0x5a   :  { %195 = vmatmul.f32.gmra.mxu0 %v29_v7 }
  0x5c   :  { %524 = vmatmul.msk.f32.gmra.mxu3 %vm109_vm0, %v32_v8 }
  0x60   :  { %508 = vmatmul.msk.f32.gmra.mxu1 %vm109_vm0, %v32_v8 }
  0x61   :  { %328 = vmatmul.f32.gmra.mxu2 %v31_v9 }
  0x62   :  { %198 = vmatmul.f32.gmra.mxu0 %v31_v9 }
  0x64   :  { %525 = vmatmul.msk.f32.gmra.mxu3 %vm109_vm0, %v34_v10 }
  0x68   :  { %509 = vmatmul.msk.f32.gmra.mxu1 %vm109_vm0, %v34_v10 }
  0x69   :  { %331 = vmatmul.f32.gmra.mxu2 %v33_v11 }
  0x6a   :  { %201 = vmatmul.f32.gmra.mxu0 %v33_v11 }
  0x6c   :  { %526 = vmatmul.msk.f32.gmra.mxu3 %vm109_vm0, %v36_v12 }
  0x70   :  { %510 = vmatmul.msk.f32.gmra.mxu1 %vm109_vm0, %v36_v12 }
  0x71   :  { %334 = vmatmul.f32.gmra.mxu2 %v35_v13 }
  0x72   :  { %204 = vmatmul.f32.gmra.mxu0 %v35_v13 }
  0x74   :  { %527 = vmatmul.msk.f32.gmra.mxu3 %vm109_vm0, %v38_v14 }
  0x78   :  { %511 = vmatmul.msk.f32.gmra.mxu1 %vm109_vm0, %v38_v14 }
  0x79   :  { %337 = vmatmul.f32.gmra.mxu2 %v37_v15 }
  0x7a   :  { %207 = vmatmul.f32.gmra.mxu0 %v37_v15 }
  0x7c   :  { %528 = vmatmul.msk.f32.gmra.mxu3 %vm109_vm0, %v40_v16 }
  0x80   :  { %512 = vmatmul.msk.f32.gmra.mxu1 %vm109_vm0, %v40_v16 }
  0x81   :  { %340 = vmatmul.f32.gmra.mxu2 %v39_v17 }
  0x82   :  { %210 = vmatmul.f32.gmra.mxu0 %v39_v17 }
  0x84   :  { %529 = vmatmul.msk.f32.gmra.mxu3 %vm109_vm0, %v42_v18 }
  0x88   :  { %513 = vmatmul.msk.f32.gmra.mxu1 %vm109_vm0, %v42_v18 }
  0x89   :  { %343 = vmatmul.f32.gmra.mxu2 %v41_v19 }
  0x8a   :  { %213 = vmatmul.f32.gmra.mxu0 %v41_v19 }
  0x8c   :  { %530 = vmatmul.msk.f32.gmra.mxu3 %vm109_vm0, %v44_v20 }
  0x90   :  { %514 = vmatmul.msk.f32.gmra.mxu1 %vm109_vm0, %v44_v20 }
  0x91   :  { %346 = vmatmul.f32.gmra.mxu2 %v43_v21 }
  0x92   :  { %216 = vmatmul.f32.gmra.mxu0 %v43_v21 }
  0x94   :  { %531 = vmatmul.msk.f32.gmra.mxu3 %vm109_vm0, %v46_v22 }
  0x98   :  { %515 = vmatmul.msk.f32.gmra.mxu1 %vm109_vm0, %v46_v22 }
  0x99   :  { %349 = vmatmul.f32.gmra.mxu2 %v45_v23 }
  0x9a   :  { %219 = vmatmul.f32.gmra.mxu0 %v45_v23 }
  0x9d   :  { %v240_v26 = vpop.f32.mrf.mxu1 }
  0x9f   :  { %v175_v27 = vpop.f32.mrf.mxu0  ;;  %v370_v28 = vpop.f32.mrf.mxu3 }
  0xa0   :  { %v176_v29 = vadd.f32 %v175_v27, %v883_v25 }
  0xa2   :  { %v241_v31 = vadd.f32 %v240_v26, %v176_v29 }
  0xa4   :  { %v305_v32 = vpop.f32.mrf.mxu2  ;;  %v418_v33 = vmax.f32 %v241_v31, 0.0 }
  0xa5   :  { %v306_v34 = vadd.f32 %v305_v32, %v886_v30  ;;  %v243_v35 = vpop.f32.mrf.mxu1 }
  0xa6   :  { %450 = vst [vmem:[#allocation2] sm:$0xff] %v418_v33 }
  0xa7   :  { %v371_v36 = vadd.f32 %v370_v28, %v306_v34  ;;  %v178_v37 = vpop.f32.mrf.mxu0  ;;  %v373_v38 = vpop.f32.mrf.mxu3 }
  0xa8   :  { %v179_v39 = vadd.f32 %v178_v37, %v883_v25 }
  0xa9   :  { %v419_v40 = vmax.f32 %v371_v36, 0.0 }
  0xaa   :  { %v244_v41 = vadd.f32 %v243_v35, %v179_v39 }
  0xab   :  { %451 = vst [vmem:[#allocation2 + $0x8] sm:$0xff] %v419_v40 }
  0xac   :  { %v308_v42 = vpop.f32.mrf.mxu2  ;;  %v420_v43 = vmax.f32 %v244_v41, 0.0 }
  0xad   :  { %v309_v44 = vadd.f32 %v308_v42, %v886_v30  ;;  %v246_v45 = vpop.f32.mrf.mxu1 }
  0xae   :  { %452 = vst [vmem:[#allocation2 + $0x10] sm:$0xff] %v420_v43 }
  0xaf   :  { %v374_v46 = vadd.f32 %v373_v38, %v309_v44  ;;  %v181_v47 = vpop.f32.mrf.mxu0  ;;  %v376_v48 = vpop.f32.mrf.mxu3 }
  0xb0   :  { %v182_v49 = vadd.f32 %v181_v47, %v883_v25 }
  0xb1   :  { %v421_v50 = vmax.f32 %v374_v46, 0.0 }
  0xb2   :  { %v247_v51 = vadd.f32 %v246_v45, %v182_v49 }
  0xb3   :  { %453 = vst [vmem:[#allocation2 + $0x18] sm:$0xff] %v421_v50 }
  0xb4   :  { %v311_v52 = vpop.f32.mrf.mxu2  ;;  %v422_v53 = vmax.f32 %v247_v51, 0.0 }
  0xb5   :  { %v312_v54 = vadd.f32 %v311_v52, %v886_v30  ;;  %v249_v55 = vpop.f32.mrf.mxu1 }
  0xb6   :  { %454 = vst [vmem:[#allocation2 + $0x20] sm:$0xff] %v422_v53 }
  0xb7   :  { %v377_v56 = vadd.f32 %v376_v48, %v312_v54  ;;  %v184_v57 = vpop.f32.mrf.mxu0  ;;  %v379_v58 = vpop.f32.mrf.mxu3 }
  0xb8   :  { %v185_v59 = vadd.f32 %v184_v57, %v883_v25 }
  0xb9   :  { %v423_v60 = vmax.f32 %v377_v56, 0.0 }
  0xba   :  { %v250_v61 = vadd.f32 %v249_v55, %v185_v59 }
  0xbb   :  { %455 = vst [vmem:[#allocation2 + $0x28] sm:$0xff] %v423_v60 }
  0xbc   :  { %v314_v62 = vpop.f32.mrf.mxu2  ;;  %v424_v63 = vmax.f32 %v250_v61, 0.0 }
  0xbd   :  { %v315_v0 = vadd.f32 %v314_v62, %v886_v30  ;;  %v252_v1 = vpop.f32.mrf.mxu1 }
  0xbe   :  { %456 = vst [vmem:[#allocation2 + $0x30] sm:$0xff] %v424_v63 }
  0xbf   :  { %v380_v2 = vadd.f32 %v379_v58, %v315_v0  ;;  %v187_v3 = vpop.f32.mrf.mxu0  ;;  %v382_v4 = vpop.f32.mrf.mxu3 }
  0xc0   :  { %v188_v5 = vadd.f32 %v187_v3, %v883_v25 }
  0xc1   :  { %v425_v6 = vmax.f32 %v380_v2, 0.0 }
  0xc2   :  { %v253_v7 = vadd.f32 %v252_v1, %v188_v5 }
  0xc3   :  { %457 = vst [vmem:[#allocation2 + $0x38] sm:$0xff] %v425_v6 }
  0xc4   :  { %v317_v8 = vpop.f32.mrf.mxu2  ;;  %v426_v9 = vmax.f32 %v253_v7, 0.0 }
  0xc5   :  { %v318_v10 = vadd.f32 %v317_v8, %v886_v30  ;;  %v255_v11 = vpop.f32.mrf.mxu1 }
  0xc6   :  { %458 = vst [vmem:[#allocation2 + $0x40] sm:$0xff] %v426_v9 }
  0xc7   :  { %v383_v12 = vadd.f32 %v382_v4, %v318_v10  ;;  %v190_v13 = vpop.f32.mrf.mxu0  ;;  %v385_v14 = vpop.f32.mrf.mxu3 }
  0xc8   :  { %v191_v15 = vadd.f32 %v190_v13, %v883_v25 }
  0xc9   :  { %v427_v16 = vmax.f32 %v383_v12, 0.0 }
  0xca   :  { %v256_v17 = vadd.f32 %v255_v11, %v191_v15 }
  0xcb   :  { %459 = vst [vmem:[#allocation2 + $0x48] sm:$0xff] %v427_v16 }
  0xcc   :  { %v320_v18 = vpop.f32.mrf.mxu2  ;;  %v428_v19 = vmax.f32 %v256_v17, 0.0 }
  0xcd   :  { %v321_v20 = vadd.f32 %v320_v18, %v886_v30  ;;  %v258_v21 = vpop.f32.mrf.mxu1 }
  0xce   :  { %460 = vst [vmem:[#allocation2 + $0x50] sm:$0xff] %v428_v19 }
  0xcf   :  { %v386_v22 = vadd.f32 %v385_v14, %v321_v20  ;;  %v193_v23 = vpop.f32.mrf.mxu0  ;;  %v388_v24 = vpop.f32.mrf.mxu3 }
  0xd0   :  { %v194_v26 = vadd.f32 %v193_v23, %v883_v25 }
  0xd1   :  { %v429_v27 = vmax.f32 %v386_v22, 0.0 }
  0xd2   :  { %v259_v28 = vadd.f32 %v258_v21, %v194_v26 }
  0xd3   :  { %461 = vst [vmem:[#allocation2 + $0x58] sm:$0xff] %v429_v27 }
  0xd4   :  { %v323_v29 = vpop.f32.mrf.mxu2  ;;  %v430_v31 = vmax.f32 %v259_v28, 0.0 }
  0xd5   :  { %v324_v32 = vadd.f32 %v323_v29, %v886_v30  ;;  %v261_v33 = vpop.f32.mrf.mxu1 }
  0xd6   :  { %462 = vst [vmem:[#allocation2 + $0x60] sm:$0xff] %v430_v31 }
  0xd7   :  { %v389_v34 = vadd.f32 %v388_v24, %v324_v32  ;;  %v196_v35 = vpop.f32.mrf.mxu0  ;;  %v391_v36 = vpop.f32.mrf.mxu3 }
  0xd8   :  { %v197_v37 = vadd.f32 %v196_v35, %v883_v25 }
  0xd9   :  { %v431_v38 = vmax.f32 %v389_v34, 0.0 }
  0xda   :  { %v262_v39 = vadd.f32 %v261_v33, %v197_v37 }
  0xdb   :  { %463 = vst [vmem:[#allocation2 + $0x68] sm:$0xff] %v431_v38 }
  0xdc   :  { %v326_v40 = vpop.f32.mrf.mxu2  ;;  %v432_v41 = vmax.f32 %v262_v39, 0.0 }
  0xdd   :  { %v327_v42 = vadd.f32 %v326_v40, %v886_v30  ;;  %v264_v43 = vpop.f32.mrf.mxu1 }
  0xde   :  { %464 = vst [vmem:[#allocation2 + $0x70] sm:$0xff] %v432_v41 }
  0xdf   :  { %v392_v44 = vadd.f32 %v391_v36, %v327_v42  ;;  %v199_v45 = vpop.f32.mrf.mxu0  ;;  %v394_v46 = vpop.f32.mrf.mxu3 }
  0xe0   :  { %v200_v47 = vadd.f32 %v199_v45, %v883_v25 }
  0xe1   :  { %v433_v48 = vmax.f32 %v392_v44, 0.0 }
  0xe2   :  { %v265_v49 = vadd.f32 %v264_v43, %v200_v47 }
  0xe3   :  { %465 = vst [vmem:[#allocation2 + $0x78] sm:$0xff] %v433_v48 }
  0xe4   :  { %v329_v50 = vpop.f32.mrf.mxu2  ;;  %v434_v51 = vmax.f32 %v265_v49, 0.0 }
  0xe5   :  { %v330_v52 = vadd.f32 %v329_v50, %v886_v30  ;;  %v267_v53 = vpop.f32.mrf.mxu1 }
  0xe6   :  { %466 = vst [vmem:[#allocation2 + $0x80] sm:$0xff] %v434_v51 }
  0xe7   :  { %v395_v54 = vadd.f32 %v394_v46, %v330_v52  ;;  %v202_v55 = vpop.f32.mrf.mxu0  ;;  %v397_v56 = vpop.f32.mrf.mxu3 }
  0xe8   :  { %v203_v57 = vadd.f32 %v202_v55, %v883_v25 }
  0xe9   :  { %v435_v58 = vmax.f32 %v395_v54, 0.0 }
  0xea   :  { %v268_v59 = vadd.f32 %v267_v53, %v203_v57 }
  0xeb   :  { %467 = vst [vmem:[#allocation2 + $0x88] sm:$0xff] %v435_v58 }
  0xec   :  { %v332_v60 = vpop.f32.mrf.mxu2  ;;  %v436_v61 = vmax.f32 %v268_v59, 0.0 }
  0xed   :  { %v333_v62 = vadd.f32 %v332_v60, %v886_v30  ;;  %v270_v63 = vpop.f32.mrf.mxu1 }
  0xee   :  { %468 = vst [vmem:[#allocation2 + $0x90] sm:$0xff] %v436_v61 }
  0xef   :  { %v398_v0 = vadd.f32 %v397_v56, %v333_v62  ;;  %v205_v1 = vpop.f32.mrf.mxu0  ;;  %v400_v2 = vpop.f32.mrf.mxu3 }
  0xf0   :  { %v206_v3 = vadd.f32 %v205_v1, %v883_v25 }
  0xf1   :  { %v437_v4 = vmax.f32 %v398_v0, 0.0 }
  0xf2   :  { %v271_v5 = vadd.f32 %v270_v63, %v206_v3 }
  0xf3   :  { %469 = vst [vmem:[#allocation2 + $0x98] sm:$0xff] %v437_v4 }
  0xf4   :  { %v335_v6 = vpop.f32.mrf.mxu2  ;;  %v438_v7 = vmax.f32 %v271_v5, 0.0 }
  0xf5   :  { %v336_v8 = vadd.f32 %v335_v6, %v886_v30  ;;  %v273_v9 = vpop.f32.mrf.mxu1 }
  0xf6   :  { %470 = vst [vmem:[#allocation2 + $0xa0] sm:$0xff] %v438_v7 }
  0xf7   :  { %v401_v10 = vadd.f32 %v400_v2, %v336_v8  ;;  %v208_v11 = vpop.f32.mrf.mxu0  ;;  %v403_v12 = vpop.f32.mrf.mxu3 }
  0xf8   :  { %v209_v13 = vadd.f32 %v208_v11, %v883_v25 }
  0xf9   :  { %v439_v14 = vmax.f32 %v401_v10, 0.0 }
  0xfa   :  { %v274_v15 = vadd.f32 %v273_v9, %v209_v13 }
  0xfb   :  { %471 = vst [vmem:[#allocation2 + $0xa8] sm:$0xff] %v439_v14 }
  0xfc   :  { %v338_v16 = vpop.f32.mrf.mxu2  ;;  %v440_v17 = vmax.f32 %v274_v15, 0.0 }
  0xfd   :  { %v339_v18 = vadd.f32 %v338_v16, %v886_v30  ;;  %v276_v19 = vpop.f32.mrf.mxu1 }
  0xfe   :  { %472 = vst [vmem:[#allocation2 + $0xb0] sm:$0xff] %v440_v17 }
  0xff   :  { %v404_v20 = vadd.f32 %v403_v12, %v339_v18  ;;  %v211_v21 = vpop.f32.mrf.mxu0  ;;  %v406_v22 = vpop.f32.mrf.mxu3 }
 0x100   :  { %v212_v23 = vadd.f32 %v211_v21, %v883_v25 }
 0x101   :  { %v441_v24 = vmax.f32 %v404_v20, 0.0 }
 0x102   :  { %v277_v26 = vadd.f32 %v276_v19, %v212_v23 }
 0x103   :  { %473 = vst [vmem:[#allocation2 + $0xb8] sm:$0xff] %v441_v24 }
 0x104   :  { %v341_v27 = vpop.f32.mrf.mxu2  ;;  %v442_v28 = vmax.f32 %v277_v26, 0.0 }
 0x105   :  { %v342_v29 = vadd.f32 %v341_v27, %v886_v30  ;;  %v279_v31 = vpop.f32.mrf.mxu1 }
 0x106   :  { %474 = vst [vmem:[#allocation2 + $0xc0] sm:$0xff] %v442_v28 }
 0x107   :  { %v407_v32 = vadd.f32 %v406_v22, %v342_v29  ;;  %v214_v33 = vpop.f32.mrf.mxu0  ;;  %v409_v35 = vpop.f32.mrf.mxu3 }
 0x108   :  { %v215_v34 = vadd.f32 %v214_v33, %v883_v25 }
 0x109   :  { %v443_v36 = vmax.f32 %v407_v32, 0.0 }
 0x10a   :  { %v280_v37 = vadd.f32 %v279_v31, %v215_v34 }
 0x10b   :  { %475 = vst [vmem:[#allocation2 + $0xc8] sm:$0xff] %v443_v36 }
 0x10c   :  { %v344_v38 = vpop.f32.mrf.mxu2  ;;  %v444_v39 = vmax.f32 %v280_v37, 0.0 }
 0x10d   :  { %v345_v40 = vadd.f32 %v344_v38, %v886_v30  ;;  %v282_v41 = vpop.f32.mrf.mxu1 }
 0x10e   :  { %476 = vst [vmem:[#allocation2 + $0xd0] sm:$0xff] %v444_v39 }
 0x10f   :  { %v410_v42 = vadd.f32 %v409_v35, %v345_v40  ;;  %v217_v43 = vpop.f32.mrf.mxu0  ;;  %v412_v47 = vpop.f32.mrf.mxu3 }
 0x110   :  { %v218_v44 = vadd.f32 %v217_v43, %v883_v25 }
 0x111   :  { %v445_v45 = vmax.f32 %v410_v42, 0.0 }
 0x112   :  { %v283_v46 = vadd.f32 %v282_v41, %v218_v44 }
 0x113   :  { %477 = vst [vmem:[#allocation2 + $0xd8] sm:$0xff] %v445_v45 }
 0x114   :  { %v347_v48 = vpop.f32.mrf.mxu2  ;;  %v446_v49 = vmax.f32 %v283_v46, 0.0 }
 0x115   :  { %v348_v50 = vadd.f32 %v347_v48, %v886_v30  ;;  %v285_v53 = vpop.f32.mrf.mxu1 }
 0x116   :  { %478 = vst [vmem:[#allocation2 + $0xe0] sm:$0xff] %v446_v49 }
 0x117   :  { %v413_v51 = vadd.f32 %v412_v47, %v348_v50  ;;  %v220_v52 = vpop.f32.mrf.mxu0  ;;  %v415_v59 = vpop.f32.mrf.mxu3 }
 0x118   :  { %v221_v54 = vadd.f32 %v220_v52, %v883_v25 }
 0x119   :  { %v447_v55 = vmax.f32 %v413_v51, 0.0 }
 0x11a   :  { %v286_v56 = vadd.f32 %v285_v53, %v221_v54 }
 0x11b   :  { %479 = vst [vmem:[#allocation2 + $0xe8] sm:$0xff] %v447_v55 }
 0x11c   :  { %v350_v57 = vpop.f32.mrf.mxu2  ;;  %v448_v58 = vmax.f32 %v286_v56, 0.0 }
 0x11d   :  { %v351_v60 = vadd.f32 %v350_v57, %v886_v30 }
 0x11e   :  { %480 = vst [vmem:[#allocation2 + $0xf0] sm:$0xff] %v448_v58 }
 0x11f   :  { %v416_v61 = vadd.f32 %v415_v59, %v351_v60 }
 0x121   :  { %v449_v62 = vmax.f32 %v416_v61, 0.0 }
 0x123   :  { %481 = vst [vmem:[#allocation2 + $0xf8] sm:$0xff] %v449_v62 }
 0x124   :  { %494 = dma.vmem_to_hbm [thread:$0]  %s487_s2, 4096, %s489_s27, [#allocation3], %s562_s28, %s562_s28, %s563_s29  }
 0x125   :  { %559 = dma.done.wait [#allocation3], 4096  }
 0x126   :  { %560 = vsyncadd [#allocation3], 4294963200 }
 0x127   :  { %499 = vsyncpa [#allocation3], 1 }

</bundles_post_ra>
